<compile_context>
chip_gen: v7x
topology: tpu7x:2x2x1
jax: 0.10.0
libtpu: 0.0.40
codegen_flags: <defaults>
</compile_context>

<pallas_src>
import jax
import jax.numpy as jnp
from jax import lax
from jax.experimental import pallas as pl
from jax.experimental.pallas import tpu as pltpu

FEATURE_SIZE = 14
EMBED_DIM = 64
HIDDEN_DIM = 128
HALF_HIDDEN = HIDDEN_DIM // 2
OUT_LANES = 128            # lane-dense output slab width


def policy_kernel(b3_ref, pack_ref, pool_ref, wpool_ref, wpack_ref,
                  w1_ref, w2_ref, small_ref, out_ref):
    blk_b = pool_ref.shape[0]                 # batch rows in this block
    m_blk = pack_ref.shape[0]                 # blk_b * P (flattened pack rows)
    P = m_blk // blk_b

    pool = pool_ref[...]                      # [blk_b, L, F]   f32
    pack = pack_ref[...]                      # [m_blk, F]      f32
    small = small_ref[...]                    # [8, 128] packed biases / w3

    b_pool = small[0:1, :EMBED_DIM]           # [1, E]
    b_pack = small[1:2, :EMBED_DIM]           # [1, E]
    b1 = small[2:3, :HIDDEN_DIM]              # [1, H]
    b2 = small[3:4, :HALF_HIDDEN]             # [1, H/2]
    w3_row = small[4:5, :HALF_HIDDEN]         # [1, H/2]
    b3 = b3_ref[0]                            # scalar (SMEM)

    # ---- pool summary: mean over non-zero pool cards ----------------------
    card_sums = jnp.sum(pool, axis=2)                                    # [blk_b, L]
    num_cards = jnp.sum((card_sums != 0).astype(jnp.float32),
                        axis=1, keepdims=True)                           # [blk_b, 1]
    pool_sum = jnp.sum(pool, axis=1)                                     # [blk_b, F]
    pool_summary = pool_sum * pl.reciprocal(num_cards + 1e-6, approx=True)

    # ---- pool / pack embeddings: Linear(F->E) + ReLU ----------------------
    pool_emb = jnp.maximum(
        jnp.dot(pool_summary, wpool_ref[...],
                preferred_element_type=jnp.float32) + b_pool, 0.0)       # [blk_b, E]
    pack_emb = jnp.maximum(
        jnp.dot(pack, wpack_ref[...],
                preferred_element_type=jnp.float32) + b_pack, 0.0)       # [m_blk, E]

    # ---- scorer layer 1: Linear(2E->H)+ReLU; concat split into two matmuls
    h_pool = jnp.dot(pool_emb, w1_ref[:EMBED_DIM, :],
                     preferred_element_type=jnp.float32)                 # [blk_b, H]
    h_pack = jnp.dot(pack_emb, w1_ref[EMBED_DIM:, :],
                     preferred_element_type=jnp.float32)                 # [m_blk, H]
    h1 = jnp.maximum(h_pack.reshape(blk_b, P, HIDDEN_DIM)
                     + h_pool[:, None, :] + b1, 0.0)                     # [blk_b,P,H]
    h1 = h1.reshape(m_blk, HIDDEN_DIM)

    # ---- scorer layer 2: Linear(H->H/2) + ReLU ----------------------------
    h2 = jnp.maximum(
        jnp.dot(h1, w2_ref[...],
                preferred_element_type=jnp.float32) + b2, 0.0)           # [m_blk, H/2]

    # ---- scorer layer 3: Linear(H/2->1) as VPU multiply + lane reduce -----
    h2_r = h2.reshape(blk_b, P, HALF_HIDDEN)                             # [blk_b,P,H/2]
    scores = jnp.sum(h2_r * w3_row, axis=-1) + b3                        # [blk_b, P]

    # ---- lane-dense store: place card p in lane p of a 128-wide slab ------
    sel = (lax.broadcasted_iota(jnp.int32, (P, OUT_LANES), 0) ==
           lax.broadcasted_iota(jnp.int32, (P, OUT_LANES), 1)).astype(jnp.float32)
    out_ref[...] = jnp.dot(scores, sel, preferred_element_type=jnp.float32)


def policy_network_pallas(pack, pool, params):
    B, P, F = pack.shape
    L = pool.shape[1]
    wpool, bpool, wpack, bpack, w1, b1, w2, b2, w3, b3 = params

    # Batch tile: multiple of 8 (sublane tile); larger when B is large.
    # Per-step VMEM at block_b=128: ~2.5 MiB, far under scoped limits on all gens.
    block_b = 128 if B >= 128 else 8
    n_blocks = -(-B // block_b)
    B_pad = n_blocks * block_b
    if B_pad != B:
        pad = B_pad - B
        pack = jnp.pad(pack, ((0, pad), (0, 0), (0, 0)))
        pool = jnp.pad(pool, ((0, pad), (0, 0), (0, 0)))

    # Flatten (B, P) -> M so the pack path is a plain 2-D matmul.
    pack_flat = pack.reshape(B_pad * P, F)

    # Pack all small params (biases + final weight row) into one VMEM tile.
    small = jnp.zeros((8, 128), jnp.float32)
    small = small.at[0, :EMBED_DIM].set(bpool)
    small = small.at[1, :EMBED_DIM].set(bpack)
    small = small.at[2, :HIDDEN_DIM].set(b1)
    small = small.at[3, :HALF_HIDDEN].set(b2)
    small = small.at[4, :HALF_HIDDEN].set(w3[:, 0])
    b3_smem = b3.reshape(1).astype(jnp.float32)

    m_blk = block_b * P
    const2 = lambda i: (0, 0)

    out = pl.pallas_call(
        policy_kernel,
        out_shape=jax.ShapeDtypeStruct((B_pad, OUT_LANES), jnp.float32),
        grid=(n_blocks,),
        in_specs=[
            pl.BlockSpec((1,), lambda i: (0,),
                         memory_space=pltpu.MemorySpace.SMEM),           # b3
            pl.BlockSpec((m_blk, F), lambda i: (i, 0)),                  # pack (flat)
            pl.BlockSpec((block_b, L, F), lambda i: (i, 0, 0)),          # pool
            pl.BlockSpec((F, EMBED_DIM), const2),                        # wpool
            pl.BlockSpec((F, EMBED_DIM), const2),                        # wpack
            pl.BlockSpec((2 * EMBED_DIM, HIDDEN_DIM), const2),           # w1
            pl.BlockSpec((HIDDEN_DIM, HALF_HIDDEN), const2),             # w2
            pl.BlockSpec((8, 128), const2),                              # small
        ],
        out_specs=pl.BlockSpec((block_b, OUT_LANES), lambda i: (i, 0)),
        compiler_params=pltpu.CompilerParams(
            dimension_semantics=("parallel",)),
    )(b3_smem, pack_flat, pool, wpool, wpack, w1, w2, small)

    return out[:B, :P]


def policy_network_ref(pack, pool, params):
    """Pure-JAX reference mirroring the PyTorch forward exactly."""
    wpool, bpool, wpack, bpack, w1, b1, w2, b2, w3, b3 = params
    hi = jax.lax.Precision.HIGHEST
    num_cards = jnp.sum((jnp.sum(pool, axis=2) != 0).astype(jnp.float32),
                        axis=1, keepdims=True)
    pool_summary = jnp.sum(pool, axis=1) / (num_cards + 1e-6)
    pool_emb = jax.nn.relu(jnp.dot(pool_summary, wpool, precision=hi) + bpool)
    pack_emb = jax.nn.relu(jnp.einsum('bpf,fe->bpe', pack, wpack, precision=hi) + bpack)
    pool_exp = jnp.broadcast_to(pool_emb[:, None, :],
                                (pack.shape[0], pack.shape[1], EMBED_DIM))
    combined = jnp.concatenate([pool_exp, pack_emb], axis=2)
    h1 = jax.nn.relu(jnp.einsum('bpc,ch->bph', combined, w1, precision=hi) + b1)
    h2 = jax.nn.relu(jnp.einsum('bph,hk->bpk', h1, w2, precision=hi) + b2)
    scores = jnp.einsum('bpk,ko->bpo', h2, w3, precision=hi) + b3
    return scores[..., 0]


def init_linear(key, fan_in, fan_out):
    """Deterministic PyTorch-style uniform init; weight stored as [in, out]."""
    kw, kb = jax.random.split(key)
    bound = 1.0 / (fan_in ** 0.5)
    w = jax.random.uniform(kw, (fan_in, fan_out), jnp.float32, -bound, bound)
    b = jax.random.uniform(kb, (fan_out,), jnp.float32, -bound, bound)
    return w, b


if __name__ == "__main__":
    # ---- deterministic parameters ----
    pkey = jax.random.PRNGKey(42)
    k0, k1, k2, k3, k4 = jax.random.split(pkey, 5)
    wpool, bpool = init_linear(k0, FEATURE_SIZE, EMBED_DIM)
    wpack, bpack = init_linear(k1, FEATURE_SIZE, EMBED_DIM)
    w1, b1 = init_linear(k2, 2 * EMBED_DIM, HIDDEN_DIM)
    w2, b2 = init_linear(k3, HIDDEN_DIM, HALF_HIDDEN)
    w3, b3 = init_linear(k4, HALF_HIDDEN, 1)
    params = (wpool, bpool, wpack, bpack, w1, b1, w2, b2, w3, b3)

    # ---- deterministic small inputs ----
    B, MAX_PACK, MAX_POOL = 2, 8, 16
    key = jax.random.PRNGKey(0)
    kp, kl = jax.random.split(key)
    pack = jax.random.normal(kp, (B, MAX_PACK, FEATURE_SIZE), jnp.float32)
    pool = jax.random.normal(kl, (B, MAX_POOL, FEATURE_SIZE), jnp.float32)
    # Zero out the tail of each pool so the non-zero-card count matters.
    mask = (jnp.arange(MAX_POOL) < jnp.array([10, 5])[:, None])[..., None]
    pool = pool * mask.astype(jnp.float32)

    out = policy_network_pallas(pack, pool, params)
    jax.block_until_ready(out)

    ref = policy_network_ref(pack, pool, params)
    assert out.shape == (B, MAX_PACK)
    assert jnp.allclose(out, ref, rtol=2e-2, atol=2e-2), (out, ref)

    print("KERNEL_OK")
</pallas_src>

<mosaic_0001>
module attributes {stable_mosaic.version = 11 : i64} {
  func.func @policy_kernel(%arg0: i32, %arg1: memref<1xf32, #tpu.memory_space<smem>>, %arg2: memref<64x14xf32, #tpu.memory_space<vmem>>, %arg3: memref<8x16x14xf32, #tpu.memory_space<vmem>>, %arg4: memref<14x64xf32, #tpu.memory_space<vmem>>, %arg5: memref<14x64xf32, #tpu.memory_space<vmem>>, %arg6: memref<128x128xf32, #tpu.memory_space<vmem>>, %arg7: memref<128x64xf32, #tpu.memory_space<vmem>>, %arg8: memref<8x128xf32, #tpu.memory_space<vmem>>, %arg9: memref<8x128xf32, #tpu.memory_space<vmem>>) attributes {dimension_semantics = [#tpu.dimension_semantics<parallel>], iteration_bounds = array<i64: 1>, scalar_prefetch = 0 : i64, scratch_operands = 0 : i64, tpu.core_type = #tpu.core_type<tc>, window_params = [{transform_indices = @transform_0, window_bounds = array<i64: 1>}, {transform_indices = @transform_1, window_bounds = array<i64: 64, 14>}, {transform_indices = @transform_2, window_bounds = array<i64: 8, 16, 14>}, {pipeline_mode = #tpu.pipeline_mode<synchronous>, transform_indices = @transform_3, window_bounds = array<i64: 14, 64>}, {pipeline_mode = #tpu.pipeline_mode<synchronous>, transform_indices = @transform_4, window_bounds = array<i64: 14, 64>}, {pipeline_mode = #tpu.pipeline_mode<synchronous>, transform_indices = @transform_5, window_bounds = array<i64: 128, 128>}, {pipeline_mode = #tpu.pipeline_mode<synchronous>, transform_indices = @transform_6, window_bounds = array<i64: 128, 64>}, {pipeline_mode = #tpu.pipeline_mode<synchronous>, transform_indices = @transform_7, window_bounds = array<i64: 8, 128>}, {transform_indices = @transform_8, window_bounds = array<i64: 8, 128>}]} {
    %c0 = arith.constant 0 : index
    %c0_0 = arith.constant 0 : index
    %c0_1 = arith.constant 0 : index
    %0 = vector.load %arg3[%c0, %c0_0, %c0_1] : memref<8x16x14xf32, #tpu.memory_space<vmem>>, vector<8x16x14xf32>
    %c0_2 = arith.constant 0 : index
    %c0_3 = arith.constant 0 : index
    %1 = vector.load %arg2[%c0_2, %c0_3] : memref<64x14xf32, #tpu.memory_space<vmem>>, vector<64x14xf32>
    %c0_4 = arith.constant 0 : index
    %c0_5 = arith.constant 0 : index
    %2 = vector.load %arg8[%c0_4, %c0_5] : memref<8x128xf32, #tpu.memory_space<vmem>>, vector<8x128xf32>
    %3 = vector.extract_strided_slice %2 {offsets = [0, 0], sizes = [1, 64], strides = [1, 1]} : vector<8x128xf32> to vector<1x64xf32>
    %4 = vector.extract_strided_slice %2 {offsets = [1, 0], sizes = [1, 64], strides = [1, 1]} : vector<8x128xf32> to vector<1x64xf32>
    %5 = vector.extract_strided_slice %2 {offsets = [2, 0], sizes = [1, 128], strides = [1, 1]} : vector<8x128xf32> to vector<1x128xf32>
    %6 = vector.extract_strided_slice %2 {offsets = [3, 0], sizes = [1, 64], strides = [1, 1]} : vector<8x128xf32> to vector<1x64xf32>
    %7 = vector.extract_strided_slice %2 {offsets = [4, 0], sizes = [1, 64], strides = [1, 1]} : vector<8x128xf32> to vector<1x64xf32>
    %c0_6 = arith.constant 0 : index
    %8 = memref.load %arg1[%c0_6] : memref<1xf32, #tpu.memory_space<smem>>
    %cst = arith.constant dense<0.000000e+00> : vector<8x16xf32>
    %9 = vector.multi_reduction <add>, %0, %cst [2] : vector<8x16x14xf32> to vector<8x16xf32>
    %cst_7 = arith.constant 0.000000e+00 : f32
    %10 = vector.broadcast %cst_7 : f32 to vector<8x16xf32>
    %11 = arith.cmpf one, %9, %10 : vector<8x16xf32>
    %12 = arith.extui %11 : vector<8x16xi1> to vector<8x16xi32>
    %13 = arith.sitofp %12 : vector<8x16xi32> to vector<8x16xf32>
    %cst_8 = arith.constant dense<0.000000e+00> : vector<8xf32>
    %14 = vector.multi_reduction <add>, %13, %cst_8 [1] : vector<8x16xf32> to vector<8xf32>
    %15 = vector.shape_cast %14 : vector<8xf32> to vector<8x1xf32>
    %cst_9 = arith.constant dense<0.000000e+00> : vector<8x14xf32>
    %16 = vector.multi_reduction <add>, %0, %cst_9 [1] : vector<8x16x14xf32> to vector<8x14xf32>
    %cst_10 = arith.constant 9.99999997E-7 : f32
    %17 = vector.broadcast %cst_10 : f32 to vector<8x1xf32>
    %18 = arith.addf %15, %17 : vector<8x1xf32>
    %19 = tpu.reciprocal %18 {approx = true} : vector<8x1xf32> -> vector<8x1xf32>
    %20 = vector.broadcast %19 : vector<8x1xf32> to vector<8x14xf32>
    %21 = arith.mulf %16, %20 : vector<8x14xf32>
    %c0_11 = arith.constant 0 : index
    %c0_12 = arith.constant 0 : index
    %22 = vector.load %arg4[%c0_11, %c0_12] : memref<14x64xf32, #tpu.memory_space<vmem>>, vector<14x64xf32>
    %cst_13 = arith.constant dense<0.000000e+00> : vector<8x64xf32>
    %23 = tpu.matmul %21, %22, %cst_13 {dimension_numbers = #tpu.dot_dimension_numbers<[1], [0], [0], [1], [0, 0, 1, 1], [], []>} : vector<8x14xf32>, vector<14x64xf32>, vector<8x64xf32> -> vector<8x64xf32>
    %24 = vector.broadcast %3 : vector<1x64xf32> to vector<8x64xf32>
    %25 = arith.addf %23, %24 : vector<8x64xf32>
    %cst_14 = arith.constant 0.000000e+00 : f32
    %26 = vector.broadcast %cst_14 : f32 to vector<8x64xf32>
    %27 = arith.maximumf %25, %26 : vector<8x64xf32>
    %c0_15 = arith.constant 0 : index
    %c0_16 = arith.constant 0 : index
    %28 = vector.load %arg5[%c0_15, %c0_16] : memref<14x64xf32, #tpu.memory_space<vmem>>, vector<14x64xf32>
    %cst_17 = arith.constant dense<0.000000e+00> : vector<64x64xf32>
    %29 = tpu.matmul %1, %28, %cst_17 {dimension_numbers = #tpu.dot_dimension_numbers<[1], [0], [0], [1], [0, 0, 1, 1], [], []>} : vector<64x14xf32>, vector<14x64xf32>, vector<64x64xf32> -> vector<64x64xf32>
    %30 = vector.broadcast %4 : vector<1x64xf32> to vector<64x64xf32>
    %31 = arith.addf %29, %30 : vector<64x64xf32>
    %cst_18 = arith.constant 0.000000e+00 : f32
    %32 = vector.broadcast %cst_18 : f32 to vector<64x64xf32>
    %33 = arith.maximumf %31, %32 : vector<64x64xf32>
    %c0_19 = arith.constant 0 : index
    %c0_20 = arith.constant 0 : index
    %34 = vector.load %arg6[%c0_19, %c0_20] : memref<128x128xf32, #tpu.memory_space<vmem>>, vector<64x128xf32>
    %cst_21 = arith.constant dense<0.000000e+00> : vector<8x128xf32>
    %35 = tpu.matmul %27, %34, %cst_21 {dimension_numbers = #tpu.dot_dimension_numbers<[1], [0], [0], [1], [0, 0, 1, 1], [], []>} : vector<8x64xf32>, vector<64x128xf32>, vector<8x128xf32> -> vector<8x128xf32>
    %c64 = arith.constant 64 : index
    %c0_22 = arith.constant 0 : index
    %36 = vector.load %arg6[%c64, %c0_22] : memref<128x128xf32, #tpu.memory_space<vmem>>, vector<64x128xf32>
    %cst_23 = arith.constant dense<0.000000e+00> : vector<64x128xf32>
    %37 = tpu.matmul %33, %36, %cst_23 {dimension_numbers = #tpu.dot_dimension_numbers<[1], [0], [0], [1], [0, 0, 1, 1], [], []>} : vector<64x64xf32>, vector<64x128xf32>, vector<64x128xf32> -> vector<64x128xf32>
    %38 = vector.shape_cast %37 : vector<64x128xf32> to vector<8x8x128xf32>
    %39 = vector.shape_cast %35 : vector<8x128xf32> to vector<8x1x128xf32>
    %40 = vector.broadcast %39 : vector<8x1x128xf32> to vector<8x8x128xf32>
    %41 = arith.addf %38, %40 : vector<8x8x128xf32>
    %42 = vector.shape_cast %5 : vector<1x128xf32> to vector<1x1x128xf32>
    %43 = vector.broadcast %42 : vector<1x1x128xf32> to vector<8x8x128xf32>
    %44 = arith.addf %41, %43 : vector<8x8x128xf32>
    %cst_24 = arith.constant 0.000000e+00 : f32
    %45 = vector.broadcast %cst_24 : f32 to vector<8x8x128xf32>
    %46 = arith.maximumf %44, %45 : vector<8x8x128xf32>
    %47 = vector.shape_cast %46 : vector<8x8x128xf32> to vector<64x128xf32>
    %c0_25 = arith.constant 0 : index
    %c0_26 = arith.constant 0 : index
    %48 = vector.load %arg7[%c0_25, %c0_26] : memref<128x64xf32, #tpu.memory_space<vmem>>, vector<128x64xf32>
    %cst_27 = arith.constant dense<0.000000e+00> : vector<64x64xf32>
    %49 = tpu.matmul %47, %48, %cst_27 {dimension_numbers = #tpu.dot_dimension_numbers<[1], [0], [0], [1], [0, 0, 1, 1], [], []>} : vector<64x128xf32>, vector<128x64xf32>, vector<64x64xf32> -> vector<64x64xf32>
    %50 = vector.broadcast %6 : vector<1x64xf32> to vector<64x64xf32>
    %51 = arith.addf %49, %50 : vector<64x64xf32>
    %cst_28 = arith.constant 0.000000e+00 : f32
    %52 = vector.broadcast %cst_28 : f32 to vector<64x64xf32>
    %53 = arith.maximumf %51, %52 : vector<64x64xf32>
    %54 = vector.shape_cast %53 : vector<64x64xf32> to vector<8x8x64xf32>
    %55 = vector.shape_cast %7 : vector<1x64xf32> to vector<1x1x64xf32>
    %56 = vector.broadcast %55 : vector<1x1x64xf32> to vector<8x8x64xf32>
    %57 = arith.mulf %54, %56 : vector<8x8x64xf32>
    %cst_29 = arith.constant dense<0.000000e+00> : vector<8x8xf32>
    %58 = vector.multi_reduction <add>, %57, %cst_29 [2] : vector<8x8x64xf32> to vector<8x8xf32>
    %59 = vector.broadcast %8 : f32 to vector<8x8xf32>
    %60 = arith.addf %58, %59 : vector<8x8xf32>
    %61 = tpu.iota {dimensions = array<i32: 0>} : vector<8x128xi32>
    %62 = tpu.iota {dimensions = array<i32: 1>} : vector<8x128xi32>
    %63 = arith.cmpi eq, %61, %62 : vector<8x128xi32>
    %64 = arith.extui %63 : vector<8x128xi1> to vector<8x128xi32>
    %65 = arith.sitofp %64 : vector<8x128xi32> to vector<8x128xf32>
    %cst_30 = arith.constant dense<0.000000e+00> : vector<8x128xf32>
    %66 = tpu.matmul %60, %65, %cst_30 {dimension_numbers = #tpu.dot_dimension_numbers<[1], [0], [0], [1], [0, 0, 1, 1], [], []>} : vector<8x8xf32>, vector<8x128xf32>, vector<8x128xf32> -> vector<8x128xf32>
    %c0_31 = arith.constant 0 : index
    %c0_32 = arith.constant 0 : index
    %67 = vector.load %arg9[%c0_31, %c0_32] : memref<8x128xf32, #tpu.memory_space<vmem>>, vector<8x128xf32>
    tpu.vector_store %arg9[%c0_31, %c0_32], %66 {strides = array<i32>} : memref<8x128xf32, #tpu.memory_space<vmem>>, vector<8x128xf32>,
    return
  }
  func.func @transform_0(%arg0: i32) -> i32 {
    %c0_i32 = arith.constant 0 : i32
    %c0_i32_0 = arith.constant 0 : i32
    return %c0_i32 : i32
  }
  func.func @transform_1(%arg0: i32) -> (i32, i32) {
    %c0_i32 = arith.constant 0 : i32
    %c0_i32_0 = arith.constant 0 : i32
    return %arg0, %c0_i32 : i32, i32
  }
  func.func @transform_2(%arg0: i32) -> (i32, i32, i32) {
    %c0_i32 = arith.constant 0 : i32
    %c0_i32_0 = arith.constant 0 : i32
    %c0_i32_1 = arith.constant 0 : i32
    return %arg0, %c0_i32, %c0_i32_0 : i32, i32, i32
  }
  func.func @transform_3(%arg0: i32) -> (i32, i32) {
    %c0_i32 = arith.constant 0 : i32
    %c0_i32_0 = arith.constant 0 : i32
    %c0_i32_1 = arith.constant 0 : i32
    return %c0_i32, %c0_i32_0 : i32, i32
  }
  func.func @transform_4(%arg0: i32) -> (i32, i32) {
    %c0_i32 = arith.constant 0 : i32
    %c0_i32_0 = arith.constant 0 : i32
    %c0_i32_1 = arith.constant 0 : i32
    return %c0_i32, %c0_i32_0 : i32, i32
  }
  func.func @transform_5(%arg0: i32) -> (i32, i32) {
    %c0_i32 = arith.constant 0 : i32
    %c0_i32_0 = arith.constant 0 : i32
    %c0_i32_1 = arith.constant 0 : i32
    return %c0_i32, %c0_i32_0 : i32, i32
  }
  func.func @transform_6(%arg0: i32) -> (i32, i32) {
    %c0_i32 = arith.constant 0 : i32
    %c0_i32_0 = arith.constant 0 : i32
    %c0_i32_1 = arith.constant 0 : i32
    return %c0_i32, %c0_i32_0 : i32, i32
  }
  func.func @transform_7(%arg0: i32) -> (i32, i32) {
    %c0_i32 = arith.constant 0 : i32
    %c0_i32_0 = arith.constant 0 : i32
    %c0_i32_1 = arith.constant 0 : i32
    return %c0_i32, %c0_i32_0 : i32, i32
  }
  func.func @transform_8(%arg0: i32) -> (i32, i32) {
    %c0_i32 = arith.constant 0 : i32
    %c0_i32_0 = arith.constant 0 : i32
    return %arg0, %c0_i32 : i32, i32
  }
}

</mosaic_0001>

<bundles_post_ra>
// kernel: tpu_custom_call.1
= control target key start
LH: loop header
LB: loop body
LE: loop exit
PB: predicated region body
PF: predicated region fallthrough
CT: control target
= control target key end

     0   :  { %vm57_vm0 = vcmask 113664   ;;  %s2016_s0 = inlined_call_operand.<no memory space> [shape: f32[1], index: 0, kind: input, shape index: {}]   ;;  %s2017_s1 = inlined_call_operand.vmem [shape: f32[64,14], index: 1, kind: input, shape index: {}]   ;;  %s2018_s2 = inlined_call_operand.vmem [shape: f32[8,16,14], index: 2, kind: input, shape index: {}]   ;;  %s2019_s3 = inlined_call_operand.vmem [shape: f32[14,64], index: 3, kind: input, shape index: {}]   ;;  %s2020_s4 = inlined_call_operand.vmem [shape: f32[14,64], index: 4, kind: input, shape index: {}]   ;;  %s2021_s5 = inlined_call_operand.vmem [shape: f32[128,128], index: 5, kind: input, shape index: {}]   ;;  %s2022_s6 = inlined_call_operand.vmem [shape: f32[128,64], index: 6, kind: input, shape index: {}]   ;;  %s2023_s7 = inlined_call_operand.vmem [shape: f32[8,128], index: 7, kind: input, shape index: {}]   ;;  %s2024_s8 = inlined_call_operand.hbm [shape: f32[8,128], index: 8, kind: output, shape index: {}]  }
   0x1   :  { %v33_v0 = vld [vmem:[%s2018_s2 + $0x10] sm:$0xff]  ;;  %v31_v1 = vld [vmem:[%s2018_s2] sm:$0xff]  ;;  %v34_v2 = vld [vmem:[%s2018_s2 + $0x18] sm:$0xff] }
   0x2   :  { %v64_v3 = vsel %vm57_vm0, %v33_v0, 0.0  ;;  %v58_v4 = vsel %vm57_vm0, %v31_v1, 0.0  ;;  %v67_v5 = vsel %vm57_vm0, %v34_v2, 0.0  ;;  %v32_v6 = vld [vmem:[%s2018_s2 + $0x8] sm:$0xff]  ;;  %v35_v8 = vld [vmem:[%s2018_s2 + $0x20] sm:$0xff]  ;;  %v38_v13 = vld [vmem:[%s2018_s2 + $0x38] sm:$0xff] }
   0x3   :  { %v36_v7 = vld [vmem:[%s2018_s2 + $0x28] sm:$0xff]  ;;  %65 = vadd.xlane.f32.xlu1 %v64_v3  ;;  %59 = vadd.xlane.f32.xlu0 %v58_v4  ;;  %v1651_v9 = vadd.f32 %v67_v5, %v64_v3  ;;  %v61_v10 = vsel %vm57_vm0, %v32_v6, 0.0  ;;  %v70_v12 = vsel %vm57_vm0, %v35_v8, 0.0  ;;  %v37_v14 = vld [vmem:[%s2018_s2 + $0x30] sm:$0xff]  ;;  %v79_v18 = vsel %vm57_vm0, %v38_v13, 0.0  ;;  %v39_v20 = vld [vmem:[%s2018_s2 + $0x40] sm:$0xff] }
   0x4   :  { %v73_v11 = vsel %vm57_vm0, %v36_v7, 0.0  ;;  %v40_v15 = vld [vmem:[%s2018_s2 + $0x48] sm:$0xff]  ;;  %v1665_v16 = vadd.f32 %v61_v10, %v58_v4  ;;  %v76_v19 = vsel %vm57_vm0, %v37_v14, 0.0  ;;  %v42_v21 = vld [vmem:[%s2018_s2 + $0x58] sm:$0xff]  ;;  %v41_v22 = vld [vmem:[%s2018_s2 + $0x50] sm:$0xff]  ;;  %v82_v25 = vsel %vm57_vm0, %v39_v20, 0.0 }
   0x5   :  { %v1667_v17 = vadd.f32 %v73_v11, %v70_v12  ;;  %v1680_v23 = vadd.f32 %v79_v18, %v76_v19  ;;  %v85_v24 = vsel %vm57_vm0, %v40_v15, 0.0 }
   0x6   :  { %v1684_v26 = vadd.f32 %v85_v24, %v82_v25 }
   0x7   :  { %14 = vsyncpa [#allocation4], 0  ;;  %68 = vadd.xlane.f32.xlu1 %v67_v5  ;;  %62 = vadd.xlane.f32.xlu0 %v61_v10  ;;  %v91_v27 = vsel %vm57_vm0, %v42_v21, 0.0  ;;  %v88_v28 = vsel %vm57_vm0, %v41_v22, 0.0  ;;  %v44_v29 = vld [vmem:[%s2018_s2 + $0x68] sm:$0xff]  ;;  %v43_v30 = vld [vmem:[%s2018_s2 + $0x60] sm:$0xff]  ;;  %v170_v44 = vlaneseq }
   0x8   :  { %v1694_v31 = vadd.f32 %v91_v27, %v88_v28  ;;  %v46_v32 = vld [vmem:[%s2018_s2 + $0x78] sm:$0xff]  ;;  %v45_v33 = vld [vmem:[%s2018_s2 + $0x70] sm:$0xff]  ;;  %v97_v34 = vsel %vm57_vm0, %v44_v29, 0.0  ;;  %v94_v35 = vsel %vm57_vm0, %v43_v30, 0.0  ;;  %v1578_v54 = vmov 0.0  }
   0x9   :  { %v1704_v36 = vadd.f32 %v97_v34, %v94_v35  ;;  %v103_v37 = vsel %vm57_vm0, %v46_v32, 0.0  ;;  %v100_v38 = vsel %vm57_vm0, %v45_v33, 0.0  ;;  %v1710_v47 = vand.u32 127, %v170_v44 }
   0xa   :  { %v1708_v39 = vadd.f32 %v103_v37, %v100_v38  ;;  %v1712_v48 = vshrl.u32 %v170_v44, 7  ;;  %vm181_vm9 = vcmask 130112   ;;  %vm246_vm14 = vcmask 1041409  }
   0xb   :  { %74 = vadd.xlane.f32.xlu1 %v73_v11  ;;  %71 = vadd.xlane.f32.xlu0 %v70_v12  ;;  %v176_v49 = vadd.s32 4294967288, %v1710_v47  ;;  %vm248_vm15 = vcmask 1042434  }
   0xc   :  { %v1717_v52 = vsub.s32 %v1710_v47, %v1712_v48 }
   0xd   :  { %v1720_v53 = vsub.s32 %v176_v49, %v1712_v48 }
   0xf   :  { %80 = vadd.xlane.f32.xlu1 %v79_v18  ;;  %77 = vadd.xlane.f32.xlu0 %v76_v19 }
  0x13   :  { %86 = vadd.xlane.f32.xlu1 %v85_v24  ;;  %83 = vadd.xlane.f32.xlu0 %v82_v25 }
  0x17   :  { %92 = vadd.xlane.f32.xlu1 %v91_v27  ;;  %89 = vadd.xlane.f32.xlu0 %v88_v28 }
  0x1b   :  { %98 = vadd.xlane.f32.xlu1 %v97_v34  ;;  %95 = vadd.xlane.f32.xlu0 %v94_v35 }
  0x1f   :  { %104 = vadd.xlane.f32.xlu1 %v103_v37  ;;  %101 = vadd.xlane.f32.xlu0 %v100_v38 }
  0x90   :  { %v66_v40 = vpop.xlane.xlu1 %65  ;;  %v60_v41 = vpop.xlane.xlu0 %59 }
  0x91   :  { %vm108_vm1 = vcmp.ne.f32.partialorder %v66_v40, 0.0  ;;  %vm106_vm2 = vcmp.ne.f32.partialorder %v60_v41, 0.0 }
  0x92   :  { %v1255_v55 = vsel %vm108_vm1, 1.0, %v1578_v54  ;;  %v1253_v56 = vsel %vm106_vm2, 1.0, %v1578_v54 }
  0x93   :  { %v186_v61 = vrot.slane %v1255_v55, %v1717_v52  ;;  %v175_v62 = vrot.slane %v1253_v56, %v1717_v52 }
  0x94   :  { %v69_v42 = vpop.xlane.xlu1 %68  ;;  %v63_v43 = vpop.xlane.xlu0 %62 }
  0x95   :  { %vm109_vm3 = vcmp.ne.f32.partialorder %v69_v42, 0.0  ;;  %vm107_vm4 = vcmp.ne.f32.partialorder %v63_v43, 0.0 }
  0x96   :  { %v1256_v59 = vsel %vm109_vm3, 1.0, %v1578_v54  ;;  %v1254_v60 = vsel %vm107_vm4, 1.0, %v1578_v54  ;;  %vm250_vm3 = vcmask 1043459   ;;  %vm252_vm4 = vcmask 1044484  }
  0x97   :  { %v190_v1 = vrot.slane %v1256_v59, %v1720_v53  ;;  %v180_v2 = vrot.slane %v1254_v60, %v1720_v53  ;;  %v348_v60 = vld [vmem:[%s2019_s3 + $0x8] sm:$0x3f] }
  0x98   :  { %v75_v45 = vpop.xlane.xlu1 %74  ;;  %v72_v46 = vpop.xlane.xlu0 %71 }
  0x99   :  { %vm111_vm5 = vcmp.ne.f32.partialorder %v75_v45, 0.0  ;;  %vm110_vm6 = vcmp.ne.f32.partialorder %v72_v46, 0.0  ;;  %v191_v18 = vsel %vm181_vm9, %v190_v1, %v186_v61  ;;  %v182_v19 = vsel %vm181_vm9, %v180_v2, %v175_v62  ;;  %v47_v1 = vld [vmem:[%s2017_s1] sm:$0xff] }
  0x9a   :  { %v1258_v63 = vsel %vm111_vm5, 1.0, %v1578_v54  ;;  %v1257_v0 = vsel %vm110_vm6, 1.0, %v1578_v54  ;;  %v247_v35 = vsel %vm246_vm14, %v191_v18, %v182_v19  ;;  %vm254_vm5 = vcmask 1045509   ;;  %1367 = vmatprep.mubr.msk.f32.mxu1 %vm57_vm0, %v47_v1  ;;  %v52_v18 = vld [vmem:[%s2017_s1 + $0x28] sm:$0xff] }
  0x9b   :  { %v199_v10 = vrot.slane %v1258_v63, %v1720_v53  ;;  %v195_v11 = vrot.slane %v1257_v0, %v1717_v52  ;;  %vm256_vm6 = vcmask 1046534   ;;  %v1579_v61 = vmov 0.0|0.0   ;;  %v452_v63 = vld [vmem:[%s2020_s4] sm:$0xff]  ;;  %v453_v0 = vld [vmem:[%s2020_s4 + $0x8] sm:$0x3f] }
  0x9c   :  { %v81_v50 = vpop.xlane.xlu1 %80  ;;  %v78_v51 = vpop.xlane.xlu0 %77  ;;  %1475 = vmatprep.subr.bf16.mxu0 %v1579_v61  ;;  %v1479_v2 = vpack.c.bf16 %v453_v0, %v452_v63 }
  0x9d   :  { %vm113_vm7 = vcmp.ne.f32.partialorder %v81_v50, 0.0  ;;  %vm112_vm8 = vcmp.ne.f32.partialorder %v78_v51, 0.0  ;;  %v200_v28 = vsel %vm181_vm9, %v199_v10, %v195_v11  ;;  %v601_v10 = vld [vmem:[%s2021_s5 + $0x18] sm:$0xff] }
  0x9e   :  { %v1260_v3 = vsel %vm113_vm7, 1.0, %v1578_v54  ;;  %v1259_v4 = vsel %vm112_vm8, 1.0, %v1578_v54  ;;  %v249_v41 = vsel %vm248_vm15, %v200_v28, %v247_v35  ;;  %v50_v11 = vld [vmem:[%s2017_s1 + $0x18] sm:$0xff]  ;;  %v294_v28 = vrot.slane %v1684_v26, 4 }
  0x9f   :  { %v208_v14 = vrot.slane %v1260_v3, %v1720_v53  ;;  %v204_v15 = vrot.slane %v1259_v4, %v1717_v52  ;;  %v598_v3 = vld [vmem:[%s2021_s5] sm:$0xff]  ;;  %v599_v4 = vld [vmem:[%s2021_s5 + $0x8] sm:$0xff] }
  0xa0   :  { %v87_v57 = vpop.xlane.xlu1 %86  ;;  %v84_v58 = vpop.xlane.xlu0 %83 }
  0xa1   :  { %vm115_vm10 = vcmp.ne.f32.partialorder %v87_v57, 0.0  ;;  %vm114_vm11 = vcmp.ne.f32.partialorder %v84_v58, 0.0  ;;  %v209_v32 = vsel %vm181_vm9, %v208_v14, %v204_v15  ;;  %v602_v14 = vld [vmem:[%s2021_s5 + $0x20] sm:$0xff]  ;;  %v603_v15 = vld [vmem:[%s2021_s5 + $0x28] sm:$0xff] }
  0xa2   :  { %v1262_v7 = vsel %vm115_vm10, 1.0, %v1578_v54  ;;  %v1261_v8 = vsel %vm114_vm11, 1.0, %v1578_v54  ;;  %v251_v43 = vsel %vm250_vm3, %v209_v32, %v249_v41  ;;  %vm258_vm10 = vcmask 1047559  }
  0xa3   :  { %v217_v20 = vrot.slane %v1262_v7, %v1720_v53  ;;  %v213_v21 = vrot.slane %v1261_v8, %v1717_v52  ;;  %vm261_vm11 = vcmask 130048   ;;  %v49_v7 = vld [vmem:[%s2017_s1 + $0x10] sm:$0xff]  ;;  %v1492_v19 = vpack.c.bf16 %v603_v15, %v602_v14 }
  0xa4   :  { %v93_v5 = vpop.xlane.xlu1 %92  ;;  %v90_v6 = vpop.xlane.xlu0 %89  ;;  %v600_v8 = vld [vmem:[%s2021_s5 + $0x10] sm:$0xff]  ;;  %v315_v32 = vrot.slane %v1708_v39, 4 }
  0xa5   :  { %vm117_vm12 = vcmp.ne.f32.partialorder %v93_v5, 0.0  ;;  %vm116_vm13 = vcmp.ne.f32.partialorder %v90_v6, 0.0  ;;  %v218_v37 = vsel %vm181_vm9, %v217_v20, %v213_v21  ;;  %v48_v5 = vld [vmem:[%s2017_s1 + $0x8] sm:$0xff]  ;;  %v1486_v6 = vpack.c.bf16 %v599_v4, %v598_v3  ;;  %v53_v20 = vld [vmem:[%s2017_s1 + $0x30] sm:$0xff]  ;;  %v54_v21 = vld [vmem:[%s2017_s1 + $0x38] sm:$0xff] }
  0xa6   :  { %v1264_v12 = vsel %vm117_vm12, 1.0, %v1578_v54  ;;  %v1263_v13 = vsel %vm116_vm13, 1.0, %v1578_v54  ;;  %v253_v51 = vsel %vm252_vm4, %v218_v37, %v251_v43  ;;  %vm377_vm12 = vcmask 1045504  }
  0xa7   :  { %v226_v25 = vrot.slane %v1264_v12, %v1720_v53  ;;  %v222_v27 = vrot.slane %v1263_v13, %v1717_v52  ;;  %vm1580_vm13 = vmmov 1   ;;  %v1489_v12 = vpack.c.bf16 %v601_v10, %v600_v8  ;;  %v51_v13 = vld [vmem:[%s2017_s1 + $0x20] sm:$0xff] }
  0xa8   :  { %v99_v22 = vpop.xlane.xlu1 %98  ;;  %v96_v24 = vpop.xlane.xlu0 %95 }
  0xa9   :  { %vm119_vm1 = vcmp.ne.f32.partialorder %v99_v22, 0.0  ;;  %vm118_vm2 = vcmp.ne.f32.partialorder %v96_v24, 0.0  ;;  %v227_v42 = vsel %vm181_vm9, %v226_v25, %v222_v27  ;;  %v273_v22 = vrot.slane %v1651_v9, 4 }
  0xaa   :  { %v1266_v29 = vsel %vm119_vm1, 1.0, %v1578_v54  ;;  %v1265_v30 = vsel %vm118_vm2, 1.0, %v1578_v54  ;;  %v255_v55 = vsel %vm254_vm5, %v227_v42, %v253_v51  ;;  %vm1581_vm1 = vmmov 0  }
  0xab   :  { %v235_v33 = vrot.slane %v1266_v29, %v1720_v53  ;;  %v231_v34 = vrot.slane %v1265_v30, %v1717_v52  ;;  %1360 = vmatprep.mubr.msk.f32.mxu0 %vm1581_vm1, %v1578_v54  ;;  %v280_v24 = vrot.slane %v1667_v17, 4  ;;  %v287_v25 = vrot.slane %v1680_v23, 4 }
  0xac   :  { %v105_v38 = vpop.xlane.xlu1 %104  ;;  %v102_v40 = vpop.xlane.xlu0 %101  ;;  %v266_v27 = vrot.slane %v1665_v16, 4  ;;  %v301_v29 = vrot.slane %v1694_v31, 4  ;;  %v308_v30 = vrot.slane %v1704_v36, 4  ;;  %v316_v42 = vadd.f32 %v315_v32, %v1708_v39 }
  0xad   :  { %vm121_vm7 = vcmp.ne.f32.partialorder %v105_v38, 0.0  ;;  %vm120_vm8 = vcmp.ne.f32.partialorder %v102_v40, 0.0  ;;  %v236_v46 = vsel %vm181_vm9, %v235_v33, %v231_v34  ;;  %v274_v33 = vadd.f32 %v273_v22, %v1651_v9 }
  0xae   :  { %v1268_v44 = vsel %vm121_vm7, 1.0, %v1578_v54  ;;  %v1267_v45 = vsel %vm120_vm8, 1.0, %v1578_v54  ;;  %v257_v57 = vsel %vm256_vm6, %v236_v46, %v255_v55  ;;  %v281_v34 = vadd.f32 %v280_v24, %v1667_v17 }
  0xaf   :  { %v244_v49 = vrot.slane %v1268_v44, %v1720_v53  ;;  %v240_v50 = vrot.slane %v1267_v45, %v1717_v52  ;;  %v347_v53 = vld [vmem:[%s2019_s3] sm:$0xff]  ;;  %v288_v35 = vadd.f32 %v287_v25, %v1680_v23  ;;  %v267_v37 = vadd.f32 %v266_v27, %v1665_v16 }
  0xb0   :  { %v1476_v62 = vpack.c.bf16 %v348_v60, %v347_v53  ;;  %v295_v38 = vadd.f32 %v294_v28, %v1684_v26  ;;  %v302_v40 = vadd.f32 %v301_v29, %v1694_v31  ;;  %v309_v41 = vadd.f32 %v308_v30, %v1704_v36 }
  0xb1   :  { %v245_v56 = vsel %vm181_vm9, %v244_v49, %v240_v50  ;;  %vm1477_vm9 = vmpackc.low %vm377_vm12, %vm1580_vm13  ;;  %v275_v43 = vrot.slane %v274_v33, 2  ;;  %v282_v44 = vrot.slane %v281_v34, 2  ;;  %v289_v45 = vrot.slane %v288_v35, 2 }
  0xb2   :  { %v259_v58 = vsel %vm258_vm10, %v245_v56, %v257_v57  ;;  %1478 = vmatpush3.bf16.msk.msra.mxu0 %vm1477_vm9, %v1476_v62  ;;  %1481 = vmatprep.subr.msk.bf16.mxu1 %vm1477_vm9, %v1479_v2  ;;  %v268_v49 = vrot.slane %v267_v37, 2  ;;  %v296_v9 = vrot.slane %v295_v38, 2  ;;  %v303_v50 = vrot.slane %v302_v40, 2 }
  0xb3   :  { %v262_v59 = vsel %vm261_vm11, %v259_v58, 0.0  ;;  %1484 = vmatpush3.bf16.msk.msra.mxu1 %vm1477_vm9, %v1479_v2  ;;  %v310_v51 = vrot.slane %v309_v41, 2  ;;  %v317_v23 = vrot.slane %v316_v42, 2  ;;  %v276_v16 = vadd.f32 %v275_v43, %v274_v33 }
  0xb4   :  { %263 = vadd.xlane.f32.xlu0 %v262_v59  ;;  %1485 = vmatprep.subr.bf16.mxu1 %v1579_v61  ;;  %v283_v55 = vadd.f32 %v282_v44, %v281_v34  ;;  %v290_v26 = vadd.f32 %v289_v45, %v288_v35  ;;  %v269_v56 = vadd.f32 %v268_v49, %v267_v37  ;;  %v604_v49 = vld [vmem:[%s2021_s5 + $0x30] sm:$0xff] }
  0xb5   :  { %v297_v31 = vadd.f32 %v296_v9, %v295_v38  ;;  %v304_v57 = vadd.f32 %v303_v50, %v302_v40  ;;  %v311_v36 = vadd.f32 %v310_v51, %v309_v41  ;;  %v318_v58 = vadd.f32 %v317_v23, %v316_v42  ;;  %v605_v9 = vld [vmem:[%s2021_s5 + $0x38] sm:$0xff]  ;;  %v681_v51 = vld [vmem:[%s2021_s5 + $0x48] sm:$0xff] }
  0xb6   :  { %1368 = vmatmul.mubr.msk.f32.vlgmr.msra.gmra.mrb[0].mxu1 %vm57_vm0, %v48_v5  ;;  %v277_v39 = vrot.slane %v276_v16, 1  ;;  %v284_v59 = vrot.slane %v283_v55, 1  ;;  %v291_v53 = vrot.slane %v290_v26, 1  ;;  %v270_v60 = vrot.slane %v269_v56, 1 }
  0xb7   :  { %1370 = vmatprep.mubr.msk.f32.mxu1 %vm57_vm0, %v49_v7  ;;  %1487 = vmatpush3.bf16.msra.mxu1 %v1486_v6  ;;  %v305_v62 = vrot.slane %v304_v57, 1  ;;  %v312_v63 = vrot.slane %v311_v36, 1  ;;  %v319_v0 = vrot.slane %v318_v58, 1  ;;  %v1495_v50 = vpack.c.bf16 %v605_v9, %v604_v49  ;;  %v944_v49 = vld [vmem:[%s2022_s6 + $0x48] sm:$0xff]  ;;  %v945_v9 = vld [vmem:[%s2022_s6 + $0x50] sm:$0xff] }
  0xb8   :  { %1488 = vmatprep.subr.bf16.mxu1 %v1579_v61  ;;  %v278_v1 = vadd.f32 %v277_v39, %v276_v16  ;;  %v285_v2 = vadd.f32 %v284_v59, %v283_v55  ;;  %v292_v3 = vadd.f32 %v291_v53, %v290_v26  ;;  %v271_v5 = vadd.f32 %v270_v60, %v269_v56  ;;  %v935_v39 = vld [vmem:[%s2022_s6] sm:$0xff]  ;;  %v936_v59 = vld [vmem:[%s2022_s6 + $0x8] sm:$0xff]  ;;  %v937_v53 = vld [vmem:[%s2022_s6 + $0x10] sm:$0xff] }
  0xb9   :  { %v306_v7 = vadd.f32 %v305_v62, %v304_v57  ;;  %v320_v14 = vadd.f32 %v319_v0, %v318_v58  ;;  %v1513_v60 = vpack.c.bf16 %v936_v59, %v935_v39  ;;  %v1887_v0 = vld [vmem:[%s2023_s7] sm:$0xff]  ;;  %vm1115_vm2 = vcmp.eq.s32.totalorder %v1712_v48, %v1710_v47 }
  0xba   :  { %1371 = vmatmul.mubr.msk.f32.gmra.mrb[2].mxu1 %vm57_vm0, %v50_v11 }
  0xbb   :  { %1373 = vmatprep.mubr.msk.f32.mxu1 %vm57_vm0, %v51_v13  ;;  %1490 = vmatpush3.bf16.msra.mxu1 %v1489_v12  ;;  %v313_v13 = vadd.f32 %v312_v63, %v311_v36  ;;  %v456_v63 = vsub.s32 1, %v1712_v48 }
  0xbc   :  { %1491 = vmatprep.subr.bf16.mxu1 %v1579_v61  ;;  %1514 = vmatprep.subr.bf16.mxu0 %v1513_v60 }
  0xbe   :  { %1374 = vmatmul.mubr.msk.f32.gmra.mrb[4].mxu1 %vm57_vm0, %v52_v18 }
  0xbf   :  { %1376 = vmatprep.mubr.msk.f32.mxu1 %vm57_vm0, %v53_v20  ;;  %1493 = vmatpush3.bf16.msra.mxu1 %v1492_v19 }
  0xc0   :  { %1494 = vmatprep.subr.bf16.mxu1 %v1579_v61  ;;  %v298_v61 = vrot.slane %v297_v31, 1 }
  0xc2   :  { %1377 = vmatmul.mubr.msk.f32.gmra.mrb[6].mxu1 %vm57_vm0, %v54_v21  ;;  %v299_v6 = vadd.f32 %v298_v61, %v297_v31  ;;  %v938_v61 = vld [vmem:[%s2022_s6 + $0x18] sm:$0xff] }
  0xc3   :  { %1395 = vmatprep.mubr.msk.f32.mxu1 %vm1581_vm1, %v1578_v54  ;;  %1496 = vmatpush3.bf16.msra.mxu1 %v1495_v50  ;;  %v1517_v62 = vpack.c.bf16 %v938_v61, %v937_v53 }
 0x141   :  { %v264_v46 = vpop.xlane.xlu0 %263 }
 0x142   :  { %v321_v17 = vadd.f32 1e-06, %v264_v46 }
 0x144   :  { %1552 = vrcp.f32 %v321_v17  ;;  %v680_v17 = vld [vmem:[%s2021_s5 + $0x40] sm:$0xff] }
 0x145   :  { %v1497_v23 = vpack.c.bf16 %v681_v51, %v680_v17  ;;  %v946_v17 = vld [vmem:[%s2022_s6 + $0x58] sm:$0xff] }
 0x146   :  { %v1533_v51 = vpack.c.bf16 %v946_v17, %v945_v9 }
 0x147   :  { %1498 = vmatprep.subr.bf16.mxu1 %v1497_v23 }
 0x14e   :  { %v1553_v4 = vpop.eup %1552 }
 0x14f   :  { %v324_v8 = vrot.slane %v1553_v4, 1  ;;  %v325_v10 = vrot.slane %v1553_v4, 2  ;;  %v326_v11 = vrot.slane %v1553_v4, 3  ;;  %v327_v12 = vrot.slane %v1553_v4, 4 }
 0x150   :  { %v328_v15 = vrot.slane %v1553_v4, 5  ;;  %v329_v18 = vrot.slane %v1553_v4, 6  ;;  %v330_v19 = vrot.slane %v1553_v4, 7  ;;  %v339_v25 = vmul.f32 %v1553_v4, %v271_v5 }
 0x151   :  { %v340_v20 = vmul.f32 %v324_v8, %v278_v1  ;;  %v341_v21 = vmul.f32 %v325_v10, %v285_v2  ;;  %v342_v22 = vmul.f32 %v326_v11, %v292_v3  ;;  %v343_v24 = vmul.f32 %v327_v12, %v299_v6  ;;  %v682_v6 = vld [vmem:[%s2021_s5 + $0x50] sm:$0xff] }
 0x152   :  { %v344_v27 = vmul.f32 %v328_v15, %v306_v7  ;;  %v345_v30 = vmul.f32 %v329_v18, %v313_v13  ;;  %v346_v32 = vmul.f32 %v330_v19, %v320_v14  ;;  %v1890_v1 = vsub.s32 0, %v1712_v48  ;;  %v683_v7 = vld [vmem:[%s2021_s5 + $0x58] sm:$0xff]  ;;  %v684_v14 = vld [vmem:[%s2021_s5 + $0x60] sm:$0xff]  ;;  %v685_v15 = vld [vmem:[%s2021_s5 + $0x68] sm:$0xff] }
 0x153   :  { %v361_v28 = vrot.slane %v340_v20, 7  ;;  %v363_v29 = vrot.slane %v341_v21, 6  ;;  %v365_v34 = vrot.slane %v342_v22, 5  ;;  %v367_v37 = vrot.slane %v343_v24, 4  ;;  %v686_v19 = vld [vmem:[%s2021_s5 + $0x70] sm:$0xff]  ;;  %v687_v20 = vld [vmem:[%s2021_s5 + $0x78] sm:$0xff] }
 0x154   :  { %v369_v40 = vrot.slane %v344_v27, 3  ;;  %v371_v42 = vrot.slane %v345_v30, 2  ;;  %v373_v44 = vrot.slane %v346_v32, 1  ;;  %v457_v2 = vrot.slane %v1887_v0, %v456_v63 }
 0x155   :  { %v362_v33 = vsel %vm246_vm14, %v361_v28, %v339_v25  ;;  %v352_v3 = vrot.slane %v1887_v0, %v1890_v1  ;;  %v1501_v13 = vpack.c.bf16 %v683_v7, %v682_v6  ;;  %v1505_v18 = vpack.c.bf16 %v685_v15, %v684_v14 }
 0x156   :  { %v364_v35 = vsel %vm248_vm15, %v363_v29, %v362_v33  ;;  %v1509_v21 = vpack.c.bf16 %v687_v20, %v686_v19  ;;  %v917_v63 = vsub.s32 2, %v1712_v48 }
 0x157   :  { %v366_v38 = vsel %vm250_vm3, %v365_v34, %v364_v35 }
 0x158   :  { %v368_v41 = vsel %vm252_vm4, %v367_v37, %v366_v38 }
 0x159   :  { %v370_v43 = vsel %vm254_vm5, %v369_v40, %v368_v41  ;;  %v939_v41 = vld [vmem:[%s2022_s6 + $0x20] sm:$0xff] }
 0x15a   :  { %v372_v45 = vsel %vm256_vm6, %v371_v42, %v370_v43  ;;  %v940_v42 = vld [vmem:[%s2022_s6 + $0x28] sm:$0xff] }
 0x15b   :  { %v374_v46 = vsel %vm258_vm10, %v373_v44, %v372_v45  ;;  %v1521_v43 = vpack.c.bf16 %v940_v42, %v939_v41  ;;  %v941_v44 = vld [vmem:[%s2022_s6 + $0x30] sm:$0xff]  ;;  %v942_v45 = vld [vmem:[%s2022_s6 + $0x38] sm:$0xff] }
 0x15c   :  { %1361 = vmatmul.mubr.msk.f32.vlgmr.msra.gmra.mrb[0].mxu0 %vm57_vm0, %v374_v46  ;;  %vm606_vm0 = vcmask 523264   ;;  %v943_v46 = vld [vmem:[%s2022_s6 + $0x40] sm:$0xff] }
 0x15d   :  { %1516 = vmatpush3.bf16.msra.mxu0 %v1513_v60  ;;  %v1529_v50 = vpack.c.bf16 %v944_v49, %v943_v46 }
 0x15e   :  { %1518 = vmatprep.subr.bf16.mxu0 %v1517_v62 }
 0x161   :  { %1520 = vmatpush3.bf16.msra.mxu0 %v1517_v62 }
 0x162   :  { %1522 = vmatprep.subr.bf16.mxu0 %v1521_v43 }
 0x165   :  { %1524 = vmatpush3.bf16.msra.mxu0 %v1521_v43 }
 0x189   :  { %v1369_v16 = vpop.f32.mrb[0].mxu1 }
 0x18a   :  { %v551_v55 = vpop.f32.mrb[1].mxu1  ;;  %v557_v24 = vadd.f32 %v1369_v16, %v457_v2  ;;  %v948_v16 = vld [vmem:[%s2022_s6 + $0x68] sm:$0xff] }
 0x18b   :  { %v552_v4 = vadd.f32 %v551_v55, %v457_v2 }
 0x18c   :  { %v591_v28 = vmax.f32 %v557_v24, 0.0 }
 0x18d   :  { %v1372_v26 = vpop.f32.mrb[2].mxu1  ;;  %v590_v11 = vmax.f32 %v552_v4, 0.0 }
 0x18e   :  { %v561_v56 = vpop.f32.mrb[3].mxu1  ;;  %v567_v29 = vadd.f32 %v1372_v26, %v457_v2  ;;  %v949_v26 = vld [vmem:[%s2022_s6 + $0x70] sm:$0xff] }
 0x18f   :  { %v562_v22 = vadd.f32 %v561_v56, %v457_v2  ;;  %v950_v56 = vld [vmem:[%s2022_s6 + $0x78] sm:$0xff] }
 0x190   :  { %v593_v33 = vmax.f32 %v567_v29, 0.0 }
 0x191   :  { %v1375_v31 = vpop.f32.mrb[4].mxu1  ;;  %v592_v25 = vmax.f32 %v562_v22, 0.0 }
 0x192   :  { %v571_v57 = vpop.f32.mrb[5].mxu1  ;;  %v577_v34 = vadd.f32 %v1375_v31, %v457_v2  ;;  %v1541_v31 = vpack.c.bf16 %v950_v56, %v949_v26 }
 0x193   :  { %v572_v27 = vadd.f32 %v571_v57, %v457_v2  ;;  %v1582_v57 = vmov 1966171168  }
 0x194   :  { %v595_v37 = vmax.f32 %v577_v34, 0.0 }
 0x195   :  { %v1378_v36 = vpop.f32.mrb[6].mxu1  ;;  %v594_v30 = vmax.f32 %v572_v27, 0.0 }
 0x196   :  { %v581_v58 = vpop.f32.mrb[7].mxu1  ;;  %v587_v38 = vadd.f32 %v1378_v36, %v457_v2  ;;  %v820_v36 = vunpack.c.l.s4 %v1582_v57 }
 0x197   :  { %v582_v32 = vadd.f32 %v581_v58, %v457_v2 }
 0x198   :  { %v597_v40 = vmax.f32 %v587_v38, 0.0  ;;  %v821_v58 = vunpack.c.0.s8 %v820_v36 }
 0x199   :  { %v596_v35 = vmax.f32 %v582_v32, 0.0 }
 0x19a   :  { %v824_v39 = vsub.s32 %v821_v58, %v1712_v48  ;;  %v953_v58 = vsub.s32 3, %v1712_v48 }
 0x22f   :  { %v447_v5 = vpop.f32.mrb[0].mxu0 }
 0x230   :  { %v448_v8 = vadd.f32 %v447_v5, %v352_v3  ;;  %v1362_v10 = vpop.f32.mrb[1].mxu0  ;;  %v918_v5 = vrot.slane %v1887_v0, %v917_v63 }
 0x232   :  { %v451_v12 = vmax.f32 %v448_v8, 0.0 }
 0x234   :  { %1396 = vmatmul.mubr.msk.f32.vlgmr.msra.gmra.mrb[8].mxu1 %vm606_vm0, %v451_v12 }
 0x235   :  { %1500 = vmatpush3.bf16.msra.mxu1 %v1497_v23  ;;  %1414 = vmatprep.mubr.msk.f32.mxu1 %vm606_vm0, %v590_v11  ;;  %v947_v23 = vld [vmem:[%s2022_s6 + $0x60] sm:$0xff] }
 0x236   :  { %1502 = vmatprep.subr.bf16.mxu1 %v1501_v13  ;;  %v1537_v55 = vpack.c.bf16 %v948_v16, %v947_v23 }
 0x239   :  { %1504 = vmatpush3.bf16.msra.mxu1 %v1501_v13 }
 0x23a   :  { %1506 = vmatprep.subr.bf16.mxu1 %v1505_v18 }
 0x23d   :  { %1508 = vmatpush3.bf16.msra.mxu1 %v1505_v18 }
 0x23e   :  { %1510 = vmatprep.subr.bf16.mxu1 %v1509_v21 }
 0x241   :  { %1512 = vmatpush3.bf16.msra.mxu1 %v1509_v21 }
 0x242   :  { %1470 = vmatprep.subr.mxu1 %v1578_v54 }
 0x244   :  { %1415 = vmatmul.mubr.msk.f32.vlgmr.msra.gmra.mrb[10].mxu1 %vm606_vm0, %v591_v28 }
 0x245   :  { %1417 = vmatprep.mubr.msk.f32.mxu1 %vm606_vm0, %v592_v25 }
 0x248   :  { %1418 = vmatmul.mubr.msk.f32.gmra.mrb[12].mxu1 %vm606_vm0, %v593_v33 }
 0x249   :  { %1420 = vmatprep.mubr.msk.f32.mxu1 %vm606_vm0, %v594_v30 }
 0x24c   :  { %1421 = vmatmul.mubr.msk.f32.gmra.mrb[14].mxu1 %vm606_vm0, %v595_v37 }
 0x24d   :  { %1423 = vmatprep.mubr.msk.f32.mxu1 %vm606_vm0, %v596_v35 }
 0x250   :  { %1424 = vmatmul.mubr.msk.f32.gmra.mrb[16].mxu1 %vm606_vm0, %v597_v40 }
 0x251   :  { %1472 = vmatprep.mubr.msk.f32.mxu1 %vm1581_vm1, %v1578_v54  ;;  %v1525_v54 = vpack.c.bf16 %v942_v45, %v941_v44 }
 0x253   :  { %1526 = vmatprep.subr.bf16.mxu0 %v1525_v54 }
 0x254   :  { %1528 = vmatpush3.bf16.msra.mxu0 %v1525_v54 }
 0x255   :  { %1530 = vmatprep.subr.bf16.mxu0 %v1529_v50 }
 0x258   :  { %1532 = vmatpush3.bf16.msra.mxu0 %v1529_v50 }
 0x259   :  { %1534 = vmatprep.subr.bf16.mxu0 %v1533_v51 }
 0x25c   :  { %1536 = vmatpush3.bf16.msra.mxu0 %v1533_v51 }
 0x25d   :  { %1538 = vmatprep.subr.bf16.mxu0 %v1537_v55 }
 0x260   :  { %1540 = vmatpush3.bf16.msra.mxu0 %v1537_v55 }
 0x261   :  { %1542 = vmatprep.subr.bf16.mxu0 %v1541_v31 }
 0x264   :  { %1544 = vmatpush3.bf16.msra.mxu0 %v1541_v31 }
 0x307   :  { %v676_v59 = vpop.f32.mrb[8].mxu1 }
 0x308   :  { %v1397_v53 = vpop.f32.mrb[9].mxu1  ;;  %v825_v60 = vrot.slane %v676_v59, %v824_v39  ;;  %v818_v61 = vcombine.high %v676_v59, %v676_v59 }
 0x30a   :  { %v833_v62 = vcombine.high %v825_v60, %v825_v60  ;;  %v832_v2 = vrot.slane %v818_v61, %v824_v39  ;;  %v841_v4 = vrot.slane %v825_v60, %v824_v39 }
 0x30c   :  { %v855_v3 = vrot.slane %v833_v62, %v824_v39  ;;  %v834_v6 = vcombine.high %v832_v2, %v832_v2  ;;  %v870_v11 = vrot.slane %v841_v4, %v1890_v1  ;;  %v863_v12 = vcombine.high %v841_v4, %v841_v4 }
 0x30d   :  { %v848_v25 = vrot.slane %v832_v2, %v824_v39 }
 0x30e   :  { %v874_v7 = vrot.slane %v855_v3, %v1890_v1  ;;  %v865_v8 = vcombine.high %v855_v3, %v855_v3  ;;  %v862_v20 = vrot.slane %v834_v6, %v824_v39  ;;  %v878_v24 = vrot.slane %v863_v12, %v1890_v1 }
 0x30f   :  { %v886_v40 = vrot.slane %v848_v25, %v1890_v1  ;;  %v864_v41 = vcombine.high %v848_v25, %v848_v25  ;;  %v954_v39 = vrot.slane %v1887_v0, %v953_v58 }
 0x310   :  { %v882_v19 = vrot.slane %v865_v8, %v1890_v1  ;;  %v890_v34 = vrot.slane %v862_v20, %v1890_v1  ;;  %v866_v35 = vcombine.high %v862_v20, %v862_v20 }
 0x311   :  { %v894_v17 = vrot.slane %v864_v41, %v1890_v1 }
 0x312   :  { %v898_v49 = vrot.slane %v866_v35, %v1890_v1  ;;  %v1070_v1 = vsub.s32 4, %v1712_v48 }
 0x314   :  { %v1071_v53 = vrot.slane %v1887_v0, %v1070_v1 }
 0x317   :  { %v1416_v10 = vpop.f32.mrb[10].mxu1 }
 0x318   :  { %v908_v13 = vadd.f32 %v1416_v10, %v874_v7  ;;  %v778_v14 = vpop.f32.mrb[11].mxu1 }
 0x319   :  { %v907_v15 = vadd.f32 %v870_v11, %v778_v14 }
 0x31a   :  { %v920_v18 = vadd.f32 %v918_v5, %v908_v13 }
 0x31b   :  { %v919_v21 = vadd.f32 %v918_v5, %v907_v15  ;;  %v1419_v22 = vpop.f32.mrb[12].mxu1 }
 0x31c   :  { %v910_v27 = vadd.f32 %v1419_v22, %v882_v19  ;;  %v788_v28 = vpop.f32.mrb[13].mxu1  ;;  %v928_v32 = vmax.f32 %v920_v18, 0.0 }
 0x31d   :  { %v927_v29 = vmax.f32 %v919_v21, 0.0  ;;  %v909_v30 = vadd.f32 %v878_v24, %v788_v28 }
 0x31e   :  { %v922_v33 = vadd.f32 %v918_v5, %v910_v27 }
 0x31f   :  { %v921_v37 = vadd.f32 %v918_v5, %v909_v30  ;;  %v1422_v38 = vpop.f32.mrb[14].mxu1  ;;  %1458 = vmatprep.mubr.f32.mxu0 %v927_v29 }
 0x320   :  { %v912_v42 = vadd.f32 %v1422_v38, %v890_v34  ;;  %v798_v43 = vpop.f32.mrb[15].mxu1  ;;  %1459 = vmatmul.mubr.f32.vlgmr.msra.gmra.mrb[2].mxu0 %v928_v32  ;;  %v930_v54 = vmax.f32 %v922_v33, 0.0 }
 0x321   :  { %v929_v44 = vmax.f32 %v921_v37, 0.0  ;;  %v911_v45 = vadd.f32 %v886_v40, %v798_v43 }
 0x322   :  { %v924_v46 = vadd.f32 %v918_v5, %v912_v42 }
 0x323   :  { %v923_v9 = vadd.f32 %v918_v5, %v911_v45  ;;  %v1425_v50 = vpop.f32.mrb[16].mxu1  ;;  %1461 = vmatprep.mubr.f32.mxu0 %v929_v44  ;;  %v1583_v44 = vmov 1.0   ;;  %v1104_v45 = vstv %s2016_s0  ;;  %s1584_s0 = smov [#allocation3]  }
 0x324   :  { %v914_v51 = vadd.f32 %v1425_v50, %v898_v49  ;;  %v808_v23 = vpop.f32.mrb[17].mxu1  ;;  %1462 = vmatmul.mubr.f32.gmra.mrb[4].mxu0 %v930_v54  ;;  %v932_v26 = vmax.f32 %v924_v46, 0.0  ;;  %1471 = vmatpush3.msk.msra.mxu1 %vm1115_vm2, %v1583_v44  ;;  %s1245_s1 = sshll.u32 %s1584_s0, 4  ;;  %s1246_s1 = int_to_ptr.vmem [resolvable:$true] %s1245_s1 }
 0x325   :  { %v931_v16 = vmax.f32 %v923_v9, 0.0  ;;  %v913_v55 = vadd.f32 %v894_v17, %v808_v23  ;;  %s1554_s24 = scalar_lea.vmem %s1246_s1, 128  ;;  %p1559_p1 = scmp.lt.s32.totalorder %s1246_s1, %s1246_s1 }
 0x326   :  { %v926_v56 = vadd.f32 %v918_v5, %v914_v51  ;;  %p1555_p0 = scmp.ne.s32.totalorder %s1246_s1, %s1554_s24  ;;  %p1560_p2 = scmp.lt.s32.totalorder %s1554_s24, %s1554_s24 }
 0x327   :  { %v925_v31 = vadd.f32 %v918_v5, %v913_v55  ;;  %1464 = vmatprep.mubr.f32.mxu0 %v931_v16 }
 0x328   :  { %1465 = vmatmul.mubr.f32.gmra.mrb[6].mxu0 %v932_v26  ;;  %v934_v36 = vmax.f32 %v926_v56, 0.0  ;;  %p1561_p3 = por %p1560_p2, %p1559_p1 }
 0x329   :  { %v933_v57 = vmax.f32 %v925_v31, 0.0 }
 0x32a   :  { %p1562_p4 = pnand %p1561_p3, %p1555_p0 }
 0x32b   :  { %1467 = vmatprep.mubr.f32.mxu0 %v933_v57 }
 0x32c   :  { %1468 = vmatmul.mubr.f32.gmra.mrb[8].mxu0 %v934_v36 }
 0x3f3   :  { %v1460_v59 = vpop.f32.mrb[2].mxu0 }
 0x3f4   :  { %v1027_v60 = vadd.f32 %v1460_v59, %v954_v39  ;;  %v1021_v61 = vpop.f32.mrb[3].mxu0 }
 0x3f5   :  { %v1022_v62 = vadd.f32 %v1021_v61, %v954_v39 }
 0x3f6   :  { %v1061_v63 = vmax.f32 %v1027_v60, 0.0 }
 0x3f7   :  { %v1060_v2 = vmax.f32 %v1022_v62, 0.0  ;;  %v1463_v3 = vpop.f32.mrb[4].mxu0 }
 0x3f8   :  { %v1037_v4 = vadd.f32 %v1463_v3, %v954_v39  ;;  %v1031_v5 = vpop.f32.mrb[5].mxu0  ;;  %v1073_v6 = vmul.f32 %v1071_v53, %v1061_v63 }
 0x3f9   :  { %v1032_v7 = vadd.f32 %v1031_v5, %v954_v39  ;;  %v1072_v8 = vmul.f32 %v1071_v53, %v1060_v2 }
 0x3fa   :  { %v1063_v10 = vmax.f32 %v1037_v4, 0.0  ;;  %v1083_v11 = vsel %vm606_vm0, %v1073_v6, 0.0 }
 0x3fb   :  { %v1062_v12 = vmax.f32 %v1032_v7, 0.0  ;;  %1084 = vadd.xlane.f32.xlu0 %v1083_v11  ;;  %v1466_v13 = vpop.f32.mrb[6].mxu0  ;;  %v1080_v14 = vsel %vm606_vm0, %v1072_v8, 0.0 }
 0x3fc   :  { %v1047_v0 = vadd.f32 %v1466_v13, %v954_v39  ;;  %v1041_v15 = vpop.f32.mrb[7].mxu0  ;;  %1081 = vadd.xlane.f32.xlu1 %v1080_v14  ;;  %v1075_v18 = vmul.f32 %v1071_v53, %v1063_v10 }
 0x3fd   :  { %v1042_v19 = vadd.f32 %v1041_v15, %v954_v39  ;;  %v1074_v20 = vmul.f32 %v1071_v53, %v1062_v12 }
 0x3fe   :  { %v1065_v21 = vmax.f32 %v1047_v0, 0.0  ;;  %v1089_v22 = vsel %vm606_vm0, %v1075_v18, 0.0 }
 0x3ff   :  { %v1064_v24 = vmax.f32 %v1042_v19, 0.0  ;;  %1090 = vadd.xlane.f32.xlu0 %v1089_v22  ;;  %v1469_v25 = vpop.f32.mrb[8].mxu0  ;;  %v1086_v27 = vsel %vm606_vm0, %v1074_v20, 0.0 }
 0x400   :  { %v1057_v28 = vadd.f32 %v1469_v25, %v954_v39  ;;  %v1051_v29 = vpop.f32.mrb[9].mxu0  ;;  %1087 = vadd.xlane.f32.xlu1 %v1086_v27  ;;  %v1077_v30 = vmul.f32 %v1071_v53, %v1065_v21 }
 0x401   :  { %v1052_v32 = vadd.f32 %v1051_v29, %v954_v39  ;;  %v1076_v33 = vmul.f32 %v1071_v53, %v1064_v24 }
 0x402   :  { %v1067_v34 = vmax.f32 %v1057_v28, 0.0  ;;  %v1095_v35 = vsel %vm606_vm0, %v1077_v30, 0.0 }
 0x403   :  { %v1066_v37 = vmax.f32 %v1052_v32, 0.0  ;;  %1096 = vadd.xlane.f32.xlu0 %v1095_v35  ;;  %v1092_v38 = vsel %vm606_vm0, %v1076_v33, 0.0 }
 0x404   :  { %1093 = vadd.xlane.f32.xlu1 %v1092_v38  ;;  %v1079_v40 = vmul.f32 %v1071_v53, %v1067_v34 }
 0x405   :  { %v1078_v41 = vmul.f32 %v1071_v53, %v1066_v37 }
 0x406   :  { %v1101_v42 = vsel %vm606_vm0, %v1079_v40, 0.0 }
 0x407   :  { %1102 = vadd.xlane.f32.xlu0 %v1101_v42  ;;  %v1098_v43 = vsel %vm606_vm0, %v1078_v41, 0.0 }
 0x408   :  { %1099 = vadd.xlane.f32.xlu1 %v1098_v43 }
 0x488   :  { %v1085_v54 = vpop.xlane.xlu0 %1084 }
 0x489   :  { %v1106_v46 = vadd.f32 %v1104_v45, %v1085_v54  ;;  %v1082_v49 = vpop.xlane.xlu1 %1081 }
 0x48a   :  { %v1105_v9 = vadd.f32 %v1104_v45, %v1082_v49 }
 0x48b   :  { %v1133_v17 = vrot.slane %v1106_v46, %v1717_v52 }
 0x48c   :  { %v1091_v50 = vpop.xlane.xlu0 %1090  ;;  %v1129_v51 = vrot.slane %v1105_v9, %v1717_v52 }
 0x48d   :  { %v1088_v23 = vpop.xlane.xlu1 %1087  ;;  %v1108_v55 = vadd.f32 %v1104_v45, %v1091_v50 }
 0x48e   :  { %v1107_v16 = vadd.f32 %v1104_v45, %v1088_v23  ;;  %v1158_v26 = vsel %vm246_vm14, %v1133_v17, %v1129_v51  ;;  %vm1165_vm14 = vcmask 64512  }
 0x48f   :  { %v1141_v36 = vrot.slane %v1108_v55, %v1717_v52 }
 0x490   :  { %v1137_v47 = vrot.slane %v1107_v16, %v1717_v52  ;;  %v1097_v48 = vpop.xlane.xlu0 %1096 }
 0x491   :  { %v1094_v56 = vpop.xlane.xlu1 %1093  ;;  %v1110_v58 = vadd.f32 %v1104_v45, %v1097_v48 }
 0x492   :  { %v1159_v31 = vsel %vm248_vm15, %v1137_v47, %v1158_v26  ;;  %v1109_v57 = vadd.f32 %v1104_v45, %v1094_v56 }
 0x493   :  { %v1160_v59 = vsel %vm250_vm3, %v1141_v36, %v1159_v31  ;;  %v1149_v63 = vrot.slane %v1110_v58, %v1717_v52 }
 0x494   :  { %v1145_v39 = vrot.slane %v1109_v57, %v1717_v52  ;;  %v1103_v1 = vpop.xlane.xlu0 %1102 }
 0x495   :  { %v1112_v53 = vadd.f32 %v1104_v45, %v1103_v1  ;;  %v1100_v60 = vpop.xlane.xlu1 %1099 }
 0x496   :  { %v1161_v61 = vsel %vm252_vm4, %v1145_v39, %v1160_v59  ;;  %v1111_v62 = vadd.f32 %v1104_v45, %v1100_v60 }
 0x497   :  { %v1157_v3 = vrot.slane %v1112_v53, %v1717_v52  ;;  %v1162_v4 = vsel %vm254_vm5, %v1149_v63, %v1161_v61 }
 0x498   :  { %v1153_v2 = vrot.slane %v1111_v62, %v1717_v52 }
 0x49a   :  { %v1163_v5 = vsel %vm256_vm6, %v1153_v2, %v1162_v4 }
 0x49b   :  { %v1164_v6 = vsel %vm258_vm10, %v1157_v3, %v1163_v5 }
 0x49c   :  { %1473 = vmatmul.mubr.msk.f32.vlgmr.msra.gmra.mrb[18].mxu1 %vm1165_vm14, %v1164_v6 }
 0x56f   :  { %v1234_v7 = vpop.f32.mrb[18].mxu1 }
 0x570   :  { %1238 = vst [vmem:[#allocation3] sm:$0xff] %v1234_v7  ;;  %v1474_v8 = vpop.f32.mrb[19].mxu1 }
 0x571   :  { %1565 = shalt.err (!%p1562_p4)
}
 0x572   :  { %s1566_s26 = scalar_lea.hbm %s2024_s8, 128 }
 0x573   :  { %p1567_p5 = scmp.ne.s32.totalorder %s2024_s8, %s1566_s26  ;;  %p1570_p6 = scmp.lt.u32.totalorder %s1566_s26, %s2024_s8 }
 0x575   :  { %p1572_p7 = pnand %p1570_p6, %p1567_p5 }
 0x577   :  { %1575 = shalt.err (!%p1572_p7)
}
 0x578   :  { %1248 = dma.vmem_to_hbm [thread:$0]  %s1246_s1, 128, %s2024_s8, [#allocation4]  }
 0x579   :  { %1576 = dma.done.wait [#allocation4], 128  }
 0x57a   :  { %1577 = vsyncadd [#allocation4], 4294967168 }
 0x57b   :  { %1252 = vsyncpa [#allocation4], 1 }

</bundles_post_ra>
